<compile_context>
chip_gen: v7x
topology: tpu7x:2x2x1
jax: 0.10.0
libtpu: 0.0.40
codegen_flags: <defaults>
</compile_context>

<pallas_src>
import jax
import jax.numpy as jnp
from jax.experimental import pallas as pl
from jax.experimental.pallas import tpu as pltpu


def _round_up(a, b):
    return ((a + b - 1) // b) * b


def _make_adain_kernel(eps, n_spatial, tile_rows):
    inv_n = 1.0 / float(n_spatial)
    inv_var_denom = 1.0 / float(max(n_spatial - 1, 1))  # torch.var default: unbiased (N-1)

    def kernel(x_ref, gamma_ref, beta_ref, o_ref):
        # gamma/beta are whole, VMEM-resident (R_pad, 1) arrays: slice this
        # tile's rows instead of paying two tiny padded per-step DMAs.
        r0 = pl.multiple_of(pl.program_id(0) * tile_rows, 8)
        g = gamma_ref[pl.ds(r0, tile_rows), :].astype(jnp.float32)   # (TR, 1)
        b = beta_ref[pl.ds(r0, tile_rows), :].astype(jnp.float32)    # (TR, 1)

        x = x_ref[...].astype(jnp.float32)                            # (TR, HW_pad)

        # Single-pass statistics: the two row reductions are independent (so
        # they overlap better under the DMA) and `diff` never materializes.
        # Zero lane-padding contributes nothing to either sum.
        s1 = jnp.sum(x, axis=-1, keepdims=True)
        s2 = jnp.sum(x * x, axis=-1, keepdims=True)
        mean = s1 * inv_n
        var = jnp.maximum(s2 - s1 * mean, 0.0) * inv_var_denom        # unbiased; clamp cancellation
        inv_std = jax.lax.rsqrt(var + eps)                            # EUP rsqrt

        # Fold normalization + affine into one mul + one add per element:
        #   out = (x - mean) * (g * inv_std) + b = x * scale + shift
        scale = g * inv_std                                           # (TR, 1)
        shift = b - mean * scale                                      # (TR, 1)
        o_ref[...] = (x * scale + shift).astype(o_ref.dtype)

    return kernel


def ada_in(x, gamma, beta, eps=1e-5):
    """x: [B, C, H, W]; gamma, beta: [B, C]. Returns [B, C, H, W]."""
    B, C, H, W = x.shape
    R = B * C
    HW = H * W

    # Lane-dense layout: reduce over the last (lane) axis.  Pad H*W up to a
    # multiple of 128 so stores are unmasked full-lane vst (zero padding does
    # not perturb sum / sum-of-squares; padded output columns are sliced off).
    HW_pad = _round_up(HW, 128)
    x2 = x.reshape(R, HW)
    if HW_pad != HW:
        x2 = jnp.pad(x2, ((0, 0), (0, HW_pad - HW)))

    # ---- VMEM budgeting (generation aware) --------------------------------
    vmem_cap = 128 * 1024 * 1024
    try:
        vmem_cap = int(getattr(pltpu.get_tpu_info(), "vmem_capacity_bytes", vmem_cap))
    except Exception:
        pass
    # ~75% of physical per-core VMEM: ~48 MiB on v7x (64 MiB/TC), 96 MiB on v5e/v6e.
    vmem_limit = int(min(vmem_cap * 3 // 4, 100 * 1024 * 1024))

    in_item = jnp.dtype(x.dtype).itemsize
    out_item = in_item
    # Real per-row VMEM footprint: double-buffered input + double-buffered
    # output + ~3 f32 tile-sized live values (f32 cast, x*x, f32 result).
    footprint_per_row = HW_pad * (2 * in_item + 2 * out_item + 3 * 4)

    # gamma/beta stay resident for the whole grid (lane-padded to 128).
    gb_item = jnp.dtype(gamma.dtype).itemsize
    resident = 2 * _round_up(R, 8) * 128 * gb_item
    tile_budget = max(2 * 1024 * 1024,
                      min(32 * 1024 * 1024, vmem_limit - resident - 4 * 1024 * 1024))

    # ---- Row tiling: balanced, >= 2 tiles when possible (v7x megacore) -----
    R8 = _round_up(R, 8)
    tr_max = max(8, (tile_budget // footprint_per_row) // 8 * 8)
    # TODO(synk): rows whose footprint alone exceeds the budget (huge H*W) would
    # need an H*W-tiled two-phase variant with a cross-step accumulator.
    tr_max = min(tr_max, R8)
    num_tiles = -(-R8 // tr_max)
    if num_tiles == 1 and R8 >= 16:
        num_tiles = 2                       # keep both v7x TensorCores streaming
    elif num_tiles > 1 and num_tiles % 2 == 1:
        num_tiles += 1                      # even, balanced tile count
    TR = _round_up(-(-R8 // num_tiles), 8)
    num_tiles = -(-R // TR)
    R_pad = num_tiles * TR

    g2 = gamma.reshape(R, 1)
    b2 = beta.reshape(R, 1)
    if R_pad != R:
        g2 = jnp.pad(g2, ((0, R_pad - R), (0, 0)))
        b2 = jnp.pad(b2, ((0, R_pad - R), (0, 0)))

    out2 = pl.pallas_call(
        _make_adain_kernel(eps, HW, TR),
        out_shape=jax.ShapeDtypeStruct((R, HW_pad), x.dtype),
        grid_spec=pltpu.PrefetchScalarGridSpec(
            num_scalar_prefetch=0,
            grid=(num_tiles,),
            in_specs=[
                pl.BlockSpec((TR, HW_pad), lambda i: (i, 0)),
                # Whole gamma/beta resident in VMEM (no per-step DMA descriptors):
                pl.BlockSpec(memory_space=pltpu.MemorySpace.VMEM),
                pl.BlockSpec(memory_space=pltpu.MemorySpace.VMEM),
            ],
            out_specs=pl.BlockSpec((TR, HW_pad), lambda i: (i, 0)),
        ),
        compiler_params=pltpu.CompilerParams(
            # Row tiles are fully independent -> megacore-shardable on v7x.
            dimension_semantics=("parallel",),
            vmem_limit_bytes=vmem_limit,
        ),
    )(x2, g2, b2)

    if HW_pad != HW:
        out2 = out2[:, :HW]
    return out2.reshape(B, C, H, W)


def _reference(x, gamma, beta, eps=1e-5):
    xf = x.astype(jnp.float32)
    mean = jnp.mean(xf, axis=(2, 3), keepdims=True)
    var = jnp.var(xf, axis=(2, 3), keepdims=True, ddof=1)  # torch.var: unbiased
    out = (xf - mean) / jnp.sqrt(var + eps)
    out = out * gamma[:, :, None, None] + beta[:, :, None, None]
    return out.astype(x.dtype)


if __name__ == "__main__":
    key = jax.random.PRNGKey(0)
    k1, k2, k3 = jax.random.split(key, 3)

    B, C, H, W = 2, 4, 16, 16
    x = jax.random.normal(k1, (B, C, H, W), dtype=jnp.float32)
    gamma = jax.random.normal(k2, (B, C), dtype=jnp.float32)
    beta = jax.random.normal(k3, (B, C), dtype=jnp.float32)

    result = ada_in(x, gamma, beta)
    jax.block_until_ready(result)

    ref = _reference(x, gamma, beta)
    max_err = float(jnp.max(jnp.abs(result - ref)))
    assert jnp.allclose(result, ref, atol=1e-4, rtol=1e-4), max_err

    print("KERNEL_OK")
</pallas_src>

<mosaic_0001>
module attributes {stable_mosaic.version = 11 : i64} {
  func.func @kernel(%arg0: i32, %arg1: memref<8x256xf32, #tpu.memory_space<vmem>>, %arg2: memref<8x1xf32, #tpu.memory_space<vmem>>, %arg3: memref<8x1xf32, #tpu.memory_space<vmem>>, %arg4: memref<8x256xf32, #tpu.memory_space<vmem>>) attributes {dimension_semantics = [#tpu.dimension_semantics<parallel>], iteration_bounds = array<i64: 1>, scalar_prefetch = 0 : i64, scratch_operands = 0 : i64, tpu.core_type = #tpu.core_type<tc>, window_params = [{transform_indices = @transform_0, window_bounds = array<i64: 8, 256>}, {pipeline_mode = #tpu.pipeline_mode<synchronous>, transform_indices = @transform_1, window_bounds = array<i64: 8, 1>}, {pipeline_mode = #tpu.pipeline_mode<synchronous>, transform_indices = @transform_2, window_bounds = array<i64: 8, 1>}, {transform_indices = @transform_3, window_bounds = array<i64: 8, 256>}]} {
    %c8_i32 = arith.constant 8 : i32
    %0 = arith.muli %arg0, %c8_i32 : i32
    %1 = tpu.assume_multiple %0, 8 : i32
    %2 = arith.index_cast %1 : i32 to index
    %c0 = arith.constant 0 : index
    %3 = vector.load %arg2[%2, %c0] : memref<8x1xf32, #tpu.memory_space<vmem>>, vector<8x1xf32>
    %4 = arith.index_cast %1 : i32 to index
    %c0_0 = arith.constant 0 : index
    %5 = vector.load %arg3[%4, %c0_0] : memref<8x1xf32, #tpu.memory_space<vmem>>, vector<8x1xf32>
    %c0_1 = arith.constant 0 : index
    %c0_2 = arith.constant 0 : index
    %6 = vector.load %arg1[%c0_1, %c0_2] : memref<8x256xf32, #tpu.memory_space<vmem>>, vector<8x256xf32>
    %cst = arith.constant dense<0.000000e+00> : vector<8xf32>
    %7 = vector.multi_reduction <add>, %6, %cst [1] : vector<8x256xf32> to vector<8xf32>
    %8 = vector.shape_cast %7 : vector<8xf32> to vector<8x1xf32>
    %9 = arith.mulf %6, %6 : vector<8x256xf32>
    %cst_3 = arith.constant dense<0.000000e+00> : vector<8xf32>
    %10 = vector.multi_reduction <add>, %9, %cst_3 [1] : vector<8x256xf32> to vector<8xf32>
    %11 = vector.shape_cast %10 : vector<8xf32> to vector<8x1xf32>
    %cst_4 = arith.constant 3.906250e-03 : f32
    %12 = vector.broadcast %cst_4 : f32 to vector<8x1xf32>
    %13 = arith.mulf %8, %12 : vector<8x1xf32>
    %14 = arith.mulf %8, %13 : vector<8x1xf32>
    %15 = arith.subf %11, %14 : vector<8x1xf32>
    %cst_5 = arith.constant 0.000000e+00 : f32
    %16 = vector.broadcast %cst_5 : f32 to vector<8x1xf32>
    %17 = arith.maximumf %15, %16 : vector<8x1xf32>
    %cst_6 = arith.constant 0.00392156886 : f32
    %18 = vector.broadcast %cst_6 : f32 to vector<8x1xf32>
    %19 = arith.mulf %17, %18 : vector<8x1xf32>
    %cst_7 = arith.constant 9.99999974E-6 : f32
    %20 = vector.broadcast %cst_7 : f32 to vector<8x1xf32>
    %21 = arith.addf %19, %20 : vector<8x1xf32>
    %22 = math.rsqrt %21 : vector<8x1xf32>
    %23 = arith.mulf %3, %22 : vector<8x1xf32>
    %24 = arith.mulf %13, %23 : vector<8x1xf32>
    %25 = arith.subf %5, %24 : vector<8x1xf32>
    %26 = vector.broadcast %23 : vector<8x1xf32> to vector<8x256xf32>
    %27 = arith.mulf %6, %26 : vector<8x256xf32>
    %28 = vector.broadcast %25 : vector<8x1xf32> to vector<8x256xf32>
    %29 = arith.addf %27, %28 : vector<8x256xf32>
    %c0_8 = arith.constant 0 : index
    %c0_9 = arith.constant 0 : index
    %30 = vector.load %arg4[%c0_8, %c0_9] : memref<8x256xf32, #tpu.memory_space<vmem>>, vector<8x256xf32>
    tpu.vector_store %arg4[%c0_8, %c0_9], %29 {strides = array<i32>} : memref<8x256xf32, #tpu.memory_space<vmem>>, vector<8x256xf32>,
    return
  }
  func.func @transform_0(%arg0: i32) -> (i32, i32) {
    %c0_i32 = arith.constant 0 : i32
    %c0_i32_0 = arith.constant 0 : i32
    return %arg0, %c0_i32 : i32, i32
  }
  func.func @transform_1(%arg0: i32) -> (i32, i32) {
    %c0_i32 = arith.constant 0 : i32
    %c0_i32_0 = arith.constant 0 : i32
    %c0_i32_1 = arith.constant 0 : i32
    return %c0_i32, %c0_i32_0 : i32, i32
  }
  func.func @transform_2(%arg0: i32) -> (i32, i32) {
    %c0_i32 = arith.constant 0 : i32
    %c0_i32_0 = arith.constant 0 : i32
    %c0_i32_1 = arith.constant 0 : i32
    return %c0_i32, %c0_i32_0 : i32, i32
  }
  func.func @transform_3(%arg0: i32) -> (i32, i32) {
    %c0_i32 = arith.constant 0 : i32
    %c0_i32_0 = arith.constant 0 : i32
    return %arg0, %c0_i32 : i32, i32
  }
}

</mosaic_0001>

<bundles_post_ra>
// kernel: tpu_custom_call.1
= control target key start
LH: loop header
LB: loop body
LE: loop exit
PB: predicated region body
PF: predicated region fallthrough
CT: control target
= control target key end

     0   :  { %8 = vsyncpa [#allocation3], 0  ;;  %s283_s0 = inlined_call_operand.hbm [shape: f32[8,256], index: 0, kind: input, shape index: {}]   ;;  %s284_s1 = inlined_call_operand.hbm [shape: f32[8,1], index: 1, kind: input, shape index: {}]   ;;  %s285_s2 = inlined_call_operand.hbm [shape: f32[8,1], index: 2, kind: input, shape index: {}]   ;;  %s286_s3 = inlined_call_operand.hbm [shape: f32[8,256], index: 3, kind: output, shape index: {}]  }
   0x1   :  { %9 = vsyncpa [#allocation6], 0 }
   0x2   :  { %10 = vsyncpa [#allocation4], 0  ;;  %s210_s12 = smov [#allocation5]   ;;  %s211_s14 = smov [#allocation2]  }
   0x3   :  { %s27_s13 = sshll.u32 %s210_s12, 4  ;;  %s17_s15 = sshll.u32 %s211_s14, 4  ;;  %s28_s13 = int_to_ptr.vmem [resolvable:$true] %s27_s13  ;;  %s18_s15 = int_to_ptr.vmem [resolvable:$true] %s17_s15 }
   0x4   :  { %s116_s18 = scalar_lea.hbm %s284_s1, 128 }
   0x5   :  { %p117_p0 = scmp.ne.s32.totalorder %s284_s1, %s116_s18  ;;  %p120_p1 = scmp.lt.u32.totalorder %s116_s18, %s284_s1 }
   0x7   :  { %p122_p2 = pnand %p120_p1, %p117_p0 }
   0x9   :  { %125 = shalt.err (!%p122_p2)
}
   0xa   :  { %s126_s23 = scalar_lea.vmem %s28_s13, 128  ;;  %p131_p4 = scmp.lt.s32.totalorder %s28_s13, %s28_s13 }
   0xb   :  { %p127_p3 = scmp.ne.s32.totalorder %s28_s13, %s126_s23  ;;  %p132_p5 = scmp.lt.s32.totalorder %s126_s23, %s126_s23 }
   0xd   :  { %p133_p6 = por %p132_p5, %p131_p4 }
   0xf   :  { %p134_p7 = pnand %p133_p6, %p127_p3 }
  0x11   :  { %137 = shalt.err (!%p134_p7)
}
  0x12   :  { %30 = dma.hbm_to_vmem [thread:$0]  %s284_s1, 128, %s28_s13, [#allocation6]  }
  0x13   :  { %s138_s28 = scalar_lea.hbm %s283_s0, 256 }
  0x14   :  { %p139_p8 = scmp.ne.s32.totalorder %s283_s0, %s138_s28  ;;  %p142_p9 = scmp.lt.u32.totalorder %s138_s28, %s283_s0 }
  0x16   :  { %p144_p10 = pnand %p142_p9, %p139_p8 }
  0x18   :  { %147 = shalt.err (!%p144_p10)
}
  0x19   :  { %s148_s6 = scalar_lea.vmem %s18_s15, 256  ;;  %p153_p12 = scmp.lt.s32.totalorder %s18_s15, %s18_s15 }
  0x1a   :  { %p149_p11 = scmp.ne.s32.totalorder %s18_s15, %s148_s6  ;;  %p154_p13 = scmp.lt.s32.totalorder %s148_s6, %s148_s6 }
  0x1c   :  { %p155_p0 = por %p154_p13, %p153_p12 }
  0x1e   :  { %p156_p1 = pnand %p155_p0, %p149_p11 }
  0x20   :  { %159 = shalt.err (!%p156_p1)
}
  0x21   :  { %20 = dma.hbm_to_vmem [thread:$0]  %s283_s0, 256, %s18_s15, [#allocation3]  }
  0x22   :  { %s212_s8 = smov [#allocation7]   ;;  %s160_s12 = scalar_lea.hbm %s285_s2, 128 }
  0x23   :  { %s37_s9 = sshll.u32 %s212_s8, 4  ;;  %p161_p2 = scmp.ne.s32.totalorder %s285_s2, %s160_s12  ;;  %s38_s9 = int_to_ptr.vmem [resolvable:$true] %s37_s9 }
  0x24   :  { %p164_p3 = scmp.lt.u32.totalorder %s160_s12, %s285_s2 }
  0x26   :  { %p166_p4 = pnand %p164_p3, %p161_p2 }
  0x28   :  { %169 = shalt.err (!%p166_p4)
}
  0x29   :  { %s170_s18 = scalar_lea.vmem %s38_s9, 128  ;;  %p175_p6 = scmp.lt.s32.totalorder %s38_s9, %s38_s9 }
  0x2a   :  { %p171_p5 = scmp.ne.s32.totalorder %s38_s9, %s170_s18  ;;  %p176_p7 = scmp.lt.s32.totalorder %s170_s18, %s170_s18 }
  0x2c   :  { %p177_p8 = por %p176_p7, %p175_p6 }
  0x2e   :  { %p178_p9 = pnand %p177_p8, %p171_p5 }
  0x30   :  { %181 = shalt.err (!%p178_p9)
}
  0x31   :  { %40 = dma.hbm_to_vmem [thread:$0]  %s285_s2, 128, %s38_s9, [#allocation6]  }
  0x32   :  { %204 = dma.done.wait [#allocation3], 256  }
  0x33   :  { %205 = vsyncadd [#allocation3], 4294967040 }
  0x34   :  { %206 = dma.done.wait [#allocation6], 256  }
  0x35   :  { %207 = vsyncadd [#allocation6], 4294967040  ;;  %v55_v0 = vld [vmem:[#allocation2] sm:$0xff]  ;;  %v56_v1 = vld [vmem:[#allocation2 + $0x8] sm:$0xff]  ;;  %v213_v6 = vmov 0   ;;  %s214_s2 = smov [#allocation8]  }
  0x36   :  { %v57_v2 = vadd.f32 %v56_v1, %v55_v0  ;;  %v60_v3 = vmul.f32 %v55_v0, %v55_v0  ;;  %v61_v4 = vmul.f32 %v56_v1, %v56_v1  ;;  %112 = vset.pattern.permute.xlu1 %v213_v6  ;;  %113 = vset.pattern.permute.xlu0 %v213_v6  ;;  %v52_v15 = vld [vmem:[#allocation5] sm:$0xff]  ;;  %v54_v18 = vld [vmem:[#allocation7] sm:$0xff]  ;;  %s97_s19 = sshll.u32 %s214_s2, 4  ;;  %s98_s19 = int_to_ptr.vmem [resolvable:$true] %s97_s19 }
  0x37   :  { %s182_s20 = scalar_lea.vmem %s98_s19, 256  ;;  %p187_p11 = scmp.lt.s32.totalorder %s98_s19, %s98_s19 }
  0x38   :  { %58 = vadd.xlane.f32.xlu0 %v57_v2  ;;  %v62_v5 = vadd.f32 %v61_v4, %v60_v3  ;;  %p183_p10 = scmp.ne.s32.totalorder %s98_s19, %s182_s20  ;;  %p188_p12 = scmp.lt.s32.totalorder %s182_s20, %s182_s20 }
  0x3a   :  { %p189_p13 = por %p188_p12, %p187_p11 }
  0x3c   :  { %63 = vadd.xlane.f32.xlu0 %v62_v5  ;;  %p190_p0 = pnand %p189_p13, %p183_p10 }
  0xc5   :  { %v59_v7 = vpop.xlane.xlu0 %58 }
  0xc6   :  { %v65_v8 = vmul.f32 0.00390625, %v59_v7 }
  0xc8   :  { %v66_v9 = vmul.f32 %v65_v8, %v59_v7 }
  0xc9   :  { %v64_v10 = vpop.xlane.xlu0 %63 }
  0xca   :  { %v67_v11 = vsub.f32 %v64_v10, %v66_v9 }
  0xcc   :  { %v68_v12 = vmax.f32 %v67_v11, 0.0 }
  0xce   :  { %v69_v13 = vmul.f32 0.003921569, %v68_v12 }
  0xd0   :  { %v70_v14 = vadd.f32 1e-05, %v69_v13 }
  0xd2   :  { %114 = vrsqrt.f32 %v70_v14 }
  0xdc   :  { %v115_v16 = vpop.eup %114 }
  0xdd   :  { %v72_v17 = vmul.f32 %v115_v16, %v52_v15 }
  0xdf   :  { %77 = vperm.xlu1 %112, %v72_v17   ;;  %v73_v19 = vmul.f32 %v72_v17, %v65_v8 }
  0xe1   :  { %v74_v20 = vsub.f32 %v54_v18, %v73_v19 }
  0xe3   :  { %84 = vperm.xlu1 %112, %v74_v20  }
 0x15e   :  { %v78_v21 = vpop.permute.xlu1 %77 }
 0x15f   :  { %v80_v22 = vmul.f32 %v78_v21, %v55_v0  ;;  %v81_v23 = vmul.f32 %v78_v21, %v56_v1 }
 0x162   :  { %v85_v24 = vpop.permute.xlu1 %84 }
 0x163   :  { %v87_v25 = vadd.f32 %v85_v24, %v80_v22  ;;  %v88_v26 = vadd.f32 %v85_v24, %v81_v23 }
 0x165   :  { %89 = vst [vmem:[#allocation8] sm:$0xff] %v87_v25  ;;  %90 = vst [vmem:[#allocation8 + $0x8] sm:$0xff] %v88_v26 }
 0x166   :  { %193 = shalt.err (!%p190_p0)
}
 0x167   :  { %s194_s23 = scalar_lea.hbm %s286_s3, 256 }
 0x168   :  { %p195_p1 = scmp.ne.s32.totalorder %s286_s3, %s194_s23  ;;  %p198_p2 = scmp.lt.u32.totalorder %s194_s23, %s286_s3 }
 0x16a   :  { %p200_p3 = pnand %p198_p2, %p195_p1 }
 0x16c   :  { %203 = shalt.err (!%p200_p3)
}
 0x16d   :  { %100 = dma.vmem_to_hbm [thread:$0]  %s98_s19, 256, %s286_s3, [#allocation4]  }
 0x16e   :  { %208 = dma.done.wait [#allocation4], 256  }
 0x16f   :  { %209 = vsyncadd [#allocation4], 4294967040 }
 0x170   :  { %104 = vsyncpa [#allocation3], 1 }
 0x171   :  { %105 = vsyncpa [#allocation6], 1 }
 0x172   :  { %106 = vsyncpa [#allocation4], 1 }

</bundles_post_ra>
